<compile_context>
chip_gen: v7x
topology: tpu7x:2x2x1
jax: 0.10.0
libtpu: 0.0.40
codegen_flags: <defaults>
</compile_context>

<pallas_src>
import functools

import jax
import jax.numpy as jnp
from jax.experimental import pallas as pl
from jax.experimental.pallas import tpu as pltpu

LANE = 128
_MIB = 1 << 20


def _round_up(x, m):
    return (x + m - 1) // m * m


def _vmem_capacity_bytes():
    """Per-core VMEM capacity; conservative 64 MiB fallback (v7x)."""
    try:
        info = pltpu.get_tpu_info()
        cap = int(getattr(info, "vmem_capacity_bytes", 0))
        if cap > 0:
            return cap
    except Exception:
        pass
    return 64 * _MIB


def _fit_tile(target, n_pad):
    """Largest multiple of 128 that is <= target and divides n_pad."""
    t = min(target, n_pad)
    t = max((t // LANE) * LANE, LANE)
    while n_pad % t:
        t -= LANE
    return t


# ----------------------------------------------------------------------------
# Fused small-graph path: one pallas_call, everything resident in VMEM.
# ----------------------------------------------------------------------------
def _gcn_fused_kernel(a_ref, x_ref, w1_ref, b1_ref, w2_ref, b2_ref, o_ref):
    f32, bf16 = jnp.float32, jnp.bfloat16
    a = a_ref[...]                                               # (N, N) bf16
    # layer 1: h = relu(A @ (X @ W1) + b1)
    xw = jnp.dot(x_ref[...], w1_ref[...], preferred_element_type=f32)
    h = jnp.dot(a, xw.astype(bf16), preferred_element_type=f32)
    h = jnp.maximum(h + b1_ref[...], 0.0)
    # layer 2: out = A @ (h @ W2) + b2
    hw = jnp.dot(h.astype(bf16), w2_ref[...], preferred_element_type=f32)
    out = jnp.dot(a, hw.astype(bf16), preferred_element_type=f32)
    o_ref[...] = (out + b2_ref[...]).astype(o_ref.dtype)


def _gcn_fused(a_bf, x_bf, w1, b1, w2, b2, *, out_dtype, vmem_limit):
    n = a_bf.shape[0]
    f_in_pad = x_bf.shape[1]
    f_pad = w1.shape[1]
    vmem_spec = pl.BlockSpec(memory_space=pltpu.MemorySpace.VMEM)

    flops = 2 * (n * f_in_pad * f_pad + 2 * n * n * f_pad + n * f_pad * f_pad)
    bytes_accessed = (2 * (a_bf.size + x_bf.size + w1.size + w2.size)
                      + 4 * (b1.size + b2.size)
                      + n * f_pad * jnp.dtype(out_dtype).itemsize)

    return pl.pallas_call(
        _gcn_fused_kernel,
        out_shape=jax.ShapeDtypeStruct((n, f_pad), out_dtype),
        in_specs=[vmem_spec] * 6,
        out_specs=vmem_spec,
        compiler_params=pltpu.CompilerParams(vmem_limit_bytes=int(vmem_limit)),
        cost_estimate=pl.CostEstimate(
            flops=int(flops), transcendentals=0,
            bytes_accessed=int(bytes_accessed)),
    )(a_bf, x_bf, w1, b1, w2, b2)


# ----------------------------------------------------------------------------
# Tiled large-graph path: per-layer  XW = X @ W  then  out = A @ XW + b.
# ----------------------------------------------------------------------------
def _xw_kernel(x_ref, w_ref, o_ref):
    o_ref[...] = jnp.dot(x_ref[...], w_ref[...],
                         preferred_element_type=jnp.float32).astype(o_ref.dtype)


def _feature_transform(x_bf, w_bf, *, tm, vmem_limit):
    """XW = X @ W, row-tiled, bf16 output for the aggregation matmul."""
    n, f_in = x_bf.shape
    f_out = w_bf.shape[1]
    return pl.pallas_call(
        _xw_kernel,
        out_shape=jax.ShapeDtypeStruct((n, f_out), jnp.bfloat16),
        grid=(n // tm,),
        in_specs=[pl.BlockSpec((tm, f_in), lambda i: (i, 0)),
                  pl.BlockSpec((f_in, f_out), lambda i: (0, 0))],
        out_specs=pl.BlockSpec((tm, f_out), lambda i: (i, 0)),
        compiler_params=pltpu.CompilerParams(
            dimension_semantics=("parallel",),
            vmem_limit_bytes=int(vmem_limit)),
    )(x_bf, w_bf)


def _aggregate_kernel(a_ref, xw_ref, b_ref, o_ref, acc_ref, *, apply_relu):
    k = pl.program_id(1)

    @pl.when(k == 0)
    def _():
        acc_ref[...] = jnp.zeros_like(acc_ref)

    acc_ref[...] += jnp.dot(a_ref[...], xw_ref[...],
                            preferred_element_type=jnp.float32)

    @pl.when(k == pl.num_programs(1) - 1)
    def _():
        out = acc_ref[...] + b_ref[...]
        if apply_relu:
            out = jnp.maximum(out, 0.0)
        o_ref[...] = out.astype(o_ref.dtype)


def _aggregate(a_bf, xw_bf, b_f32, *, apply_relu, out_dtype, tm, tk,
               vmem_limit):
    """out = A_hat @ XW + b  (+ optional ReLU), row-panel x K-tile grid."""
    n = a_bf.shape[0]
    f_out = xw_bf.shape[1]
    kernel = functools.partial(_aggregate_kernel, apply_relu=apply_relu)
    flops = 2 * n * n * f_out
    bytes_accessed = (2 * n * n + 2 * n * f_out + 4 * f_out
                      + n * f_out * jnp.dtype(out_dtype).itemsize)
    return pl.pallas_call(
        kernel,
        out_shape=jax.ShapeDtypeStruct((n, f_out), out_dtype),
        grid=(n // tm, n // tk),
        in_specs=[pl.BlockSpec((tm, tk), lambda i, k: (i, k)),
                  pl.BlockSpec((tk, f_out), lambda i, k: (k, 0)),
                  pl.BlockSpec((1, f_out), lambda i, k: (0, 0))],
        out_specs=pl.BlockSpec((tm, f_out), lambda i, k: (i, 0)),
        scratch_shapes=[pltpu.VMEM((tm, f_out), jnp.float32)],
        compiler_params=pltpu.CompilerParams(
            dimension_semantics=("parallel", "arbitrary"),
            vmem_limit_bytes=int(vmem_limit)),
        cost_estimate=pl.CostEstimate(
            flops=int(flops), transcendentals=0,
            bytes_accessed=int(bytes_accessed)),
    )(a_bf, xw_bf, b_f32)


# ----------------------------------------------------------------------------
# Wrapper
# ----------------------------------------------------------------------------
def gcn_forward(a_hat, in_feat, params, *, out_dtype=jnp.float32,
                force_tiled=False, row_tile=None, k_tile=None):
    """Two-layer GCN forward (DGL GraphConv semantics) on TPU via Pallas."""
    n = a_hat.shape[0]
    f_in = in_feat.shape[1]
    h_feats = params["w1"].shape[1]
    f_pad = _round_up(h_feats, LANE)
    f_in_pad = _round_up(f_in, LANE)

    cap = _vmem_capacity_bytes()

    def pad2(m, rows, cols):
        return jnp.pad(m, ((0, rows - m.shape[0]), (0, cols - m.shape[1])))

    # Zero padding is numerically neutral: padded lanes contract to zero and
    # relu(0 + 0) = 0 on padded feature lanes.
    w1 = pad2(params["w1"], f_in_pad, f_pad).astype(jnp.bfloat16)
    w2 = pad2(params["w2"], f_pad, f_pad).astype(jnp.bfloat16)
    b1 = pad2(params["b1"], 1, f_pad).astype(jnp.float32)
    b2 = pad2(params["b2"], 1, f_pad).astype(jnp.float32)

    # Estimated VMEM need of the fused (fully resident, single-buffered) path:
    # bf16 operands + f32 output + f32 intermediates (xw, h, out).
    fused_bytes = (2 * n * n + 2 * n * f_in_pad + 2 * f_in_pad * f_pad
                   + 2 * f_pad * f_pad + 8 * f_pad
                   + 4 * n * f_pad + 3 * 4 * n * f_pad)
    use_fused = (not force_tiled) and fused_bytes <= int(0.7 * cap)

    if use_fused:
        a_bf = a_hat.astype(jnp.bfloat16)
        x_bf = pad2(in_feat, n, f_in_pad).astype(jnp.bfloat16)
        vmem_limit = min(int(0.9 * cap), max(2 * fused_bytes, 32 * _MIB))
        out = _gcn_fused(a_bf, x_bf, w1, b1, w2, b2,
                         out_dtype=out_dtype, vmem_limit=vmem_limit)
        return out[:, :h_feats]

    # ---------------- tiled path (A_hat streamed, both TCs usable) ----------
    if cap >= 96 * _MIB:          # v5e / v6e: 128 MiB physical VMEM
        tm_d, tk_d = 1024, 2048
    else:                         # v7x: 64 MiB per-TC VMEM
        tm_d, tk_d = 512, 1024
    tm_d = row_tile or tm_d
    tk_d = k_tile or tk_d

    n_pad = _round_up(n, LANE)
    tm = _fit_tile(tm_d, n_pad)
    tk = _fit_tile(tk_d, n_pad)

    a_bf = jnp.pad(a_hat, ((0, n_pad - n), (0, n_pad - n))).astype(jnp.bfloat16)
    x_bf = pad2(in_feat, n_pad, f_in_pad).astype(jnp.bfloat16)

    # Per-step tile bytes (x2 for the pipeline's double buffers) + accumulator.
    agg_est = (2 * (tm * tk * 2 + tk * f_pad * 2 + tm * f_pad * 4 + f_pad * 4)
               + tm * f_pad * 4 + 2 * _MIB)
    agg_limit = min(int(0.9 * cap), max(agg_est, 32 * _MIB))
    xw_est = 2 * (tm * f_in_pad * 2 + f_in_pad * f_pad * 2
                  + tm * f_pad * 2) + 2 * _MIB
    xw_limit = min(int(0.9 * cap), max(xw_est, 32 * _MIB))

    # Layer 1: h = relu(A @ (X @ W1) + b1), kept bf16 for layer 2's matmuls.
    xw1 = _feature_transform(x_bf, w1, tm=tm, vmem_limit=xw_limit)
    h = _aggregate(a_bf, xw1, b1, apply_relu=True, out_dtype=jnp.bfloat16,
                   tm=tm, tk=tk, vmem_limit=agg_limit)
    # Layer 2: out = A @ (h @ W2) + b2.
    xw2 = _feature_transform(h, w2, tm=tm, vmem_limit=xw_limit)
    out = _aggregate(a_bf, xw2, b2, apply_relu=False, out_dtype=out_dtype,
                     tm=tm, tk=tk, vmem_limit=agg_limit)
    return out[:n, :h_feats]


# ----------------------------------------------------------------------------
# Helpers for the demo / validation
# ----------------------------------------------------------------------------
def _xavier_uniform(key, shape):
    fan_in, fan_out = shape
    limit = jnp.sqrt(6.0 / (fan_in + fan_out))
    return jax.random.uniform(key, shape, jnp.float32, -limit, limit)


def build_normalized_adjacency(key, num_nodes, edge_prob=0.15):
    """Random directed graph + self-loops, normalized as in DGL norm='both'."""
    a = (jax.random.uniform(key, (num_nodes, num_nodes)) < edge_prob)
    a = a.astype(jnp.float32)
    a = jnp.minimum(a + jnp.eye(num_nodes, dtype=jnp.float32), 1.0)
    d_in = 1.0 / jnp.sqrt(jnp.sum(a, axis=1))
    d_out = 1.0 / jnp.sqrt(jnp.sum(a, axis=0))
    return d_in[:, None] * a * d_out[None, :]


def _mm(a, b):
    return jnp.matmul(a, b, precision=jax.lax.Precision.HIGHEST)


def _bf(t):
    return t.astype(jnp.bfloat16).astype(jnp.float32)


def matched_reference(a_hat, x, params):
    """Reference with the same bf16 operand rounding / f32 accumulation."""
    a = _bf(a_hat)
    xw1 = _bf(_mm(_bf(x), _bf(params["w1"])))
    h = jnp.maximum(_mm(a, xw1) + params["b1"], 0.0)
    xw2 = _bf(_mm(_bf(h), _bf(params["w2"])))
    return _mm(a, xw2) + params["b2"]


def f32_reference(a_hat, x, params):
    h = jnp.maximum(_mm(a_hat, _mm(x, params["w1"])) + params["b1"], 0.0)
    return _mm(a_hat, _mm(h, params["w2"])) + params["b2"]


if __name__ == "__main__":
    key = jax.random.PRNGKey(0)
    (k_g1, k_x1, k_w1, k_w2, k_b1, k_b2, k_g2, k_x2) = jax.random.split(key, 8)

    in_feats, h_feats = 16, 32
    params = {
        "w1": _xavier_uniform(k_w1, (in_feats, h_feats)),
        "b1": 0.1 * jax.random.normal(k_b1, (1, h_feats), jnp.float32),
        "w2": _xavier_uniform(k_w2, (h_feats, h_feats)),
        "b2": 0.1 * jax.random.normal(k_b2, (1, h_feats), jnp.float32),
    }

    # --- small graph: fused single-kernel path (everything resident in VMEM)
    n1 = 64
    a1 = build_normalized_adjacency(k_g1, n1)
    x1 = jax.random.normal(k_x1, (n1, in_feats), jnp.float32)
    out1 = jax.block_until_ready(gcn_forward(a1, x1, params))
    assert out1.shape == (n1, h_feats)
    assert jnp.allclose(out1, matched_reference(a1, x1, params),
                        atol=1e-2, rtol=1e-2)
    assert jnp.allclose(out1, f32_reference(a1, x1, params),
                        atol=5e-2, rtol=5e-2)

    # --- larger graph: row-panel x K-tile tiled path (parallel row axis)
    n2 = 256
    a2 = build_normalized_adjacency(k_g2, n2)
    x2 = jax.random.normal(k_x2, (n2, in_feats), jnp.float32)
    out2 = jax.block_until_ready(
        gcn_forward(a2, x2, params, force_tiled=True, row_tile=128, k_tile=128))
    assert out2.shape == (n2, h_feats)
    assert jnp.allclose(out2, matched_reference(a2, x2, params),
                        atol=1e-2, rtol=1e-2)
    assert jnp.allclose(out2, f32_reference(a2, x2, params),
                        atol=5e-2, rtol=5e-2)

    print("KERNEL_OK")
</pallas_src>

<mosaic_0001>
module attributes {stable_mosaic.version = 11 : i64} {
  func.func @_gcn_fused_kernel(%arg0: memref<64x64xbf16, #tpu.memory_space<vmem>>, %arg1: memref<64x128xbf16, #tpu.memory_space<vmem>>, %arg2: memref<128x128xbf16, #tpu.memory_space<vmem>>, %arg3: memref<1x128xf32, #tpu.memory_space<vmem>>, %arg4: memref<128x128xbf16, #tpu.memory_space<vmem>>, %arg5: memref<1x128xf32, #tpu.memory_space<vmem>>, %arg6: memref<64x128xf32, #tpu.memory_space<vmem>>) attributes {dimension_semantics = [], scalar_prefetch = 0 : i64, scratch_operands = 0 : i64, tpu.core_type = #tpu.core_type<tc>} {
    %c0 = arith.constant 0 : index
    %c0_0 = arith.constant 0 : index
    %0 = vector.load %arg0[%c0, %c0_0] : memref<64x64xbf16, #tpu.memory_space<vmem>>, vector<64x64xbf16>
    %c0_1 = arith.constant 0 : index
    %c0_2 = arith.constant 0 : index
    %1 = vector.load %arg1[%c0_1, %c0_2] : memref<64x128xbf16, #tpu.memory_space<vmem>>, vector<64x128xbf16>
    %c0_3 = arith.constant 0 : index
    %c0_4 = arith.constant 0 : index
    %2 = vector.load %arg2[%c0_3, %c0_4] : memref<128x128xbf16, #tpu.memory_space<vmem>>, vector<128x128xbf16>
    %cst = arith.constant dense<0.000000e+00> : vector<64x128xf32>
    %3 = tpu.matmul %1, %2, %cst {dimension_numbers = #tpu.dot_dimension_numbers<[1], [0], [0], [1], [0, 0, 1, 1], [], []>} : vector<64x128xbf16>, vector<128x128xbf16>, vector<64x128xf32> -> vector<64x128xf32>
    %4 = arith.truncf %3 : vector<64x128xf32> to vector<64x128xbf16>
    %cst_5 = arith.constant dense<0.000000e+00> : vector<64x128xf32>
    %5 = tpu.matmul %0, %4, %cst_5 {dimension_numbers = #tpu.dot_dimension_numbers<[1], [0], [0], [1], [0, 0, 1, 1], [], []>} : vector<64x64xbf16>, vector<64x128xbf16>, vector<64x128xf32> -> vector<64x128xf32>
    %c0_6 = arith.constant 0 : index
    %c0_7 = arith.constant 0 : index
    %6 = vector.load %arg3[%c0_6, %c0_7] : memref<1x128xf32, #tpu.memory_space<vmem>>, vector<1x128xf32>
    %7 = vector.broadcast %6 : vector<1x128xf32> to vector<64x128xf32>
    %8 = arith.addf %5, %7 : vector<64x128xf32>
    %cst_8 = arith.constant 0.000000e+00 : f32
    %9 = vector.broadcast %cst_8 : f32 to vector<64x128xf32>
    %10 = arith.maximumf %8, %9 : vector<64x128xf32>
    %11 = arith.truncf %10 : vector<64x128xf32> to vector<64x128xbf16>
    %c0_9 = arith.constant 0 : index
    %c0_10 = arith.constant 0 : index
    %12 = vector.load %arg4[%c0_9, %c0_10] : memref<128x128xbf16, #tpu.memory_space<vmem>>, vector<128x128xbf16>
    %cst_11 = arith.constant dense<0.000000e+00> : vector<64x128xf32>
    %13 = tpu.matmul %11, %12, %cst_11 {dimension_numbers = #tpu.dot_dimension_numbers<[1], [0], [0], [1], [0, 0, 1, 1], [], []>} : vector<64x128xbf16>, vector<128x128xbf16>, vector<64x128xf32> -> vector<64x128xf32>
    %14 = arith.truncf %13 : vector<64x128xf32> to vector<64x128xbf16>
    %cst_12 = arith.constant dense<0.000000e+00> : vector<64x128xf32>
    %15 = tpu.matmul %0, %14, %cst_12 {dimension_numbers = #tpu.dot_dimension_numbers<[1], [0], [0], [1], [0, 0, 1, 1], [], []>} : vector<64x64xbf16>, vector<64x128xbf16>, vector<64x128xf32> -> vector<64x128xf32>
    %c0_13 = arith.constant 0 : index
    %c0_14 = arith.constant 0 : index
    %16 = vector.load %arg5[%c0_13, %c0_14] : memref<1x128xf32, #tpu.memory_space<vmem>>, vector<1x128xf32>
    %17 = vector.broadcast %16 : vector<1x128xf32> to vector<64x128xf32>
    %18 = arith.addf %15, %17 : vector<64x128xf32>
    %c0_15 = arith.constant 0 : index
    %c0_16 = arith.constant 0 : index
    %19 = vector.load %arg6[%c0_15, %c0_16] : memref<64x128xf32, #tpu.memory_space<vmem>>, vector<64x128xf32>
    tpu.vector_store %arg6[%c0_15, %c0_16], %18 {strides = array<i32>} : memref<64x128xf32, #tpu.memory_space<vmem>>, vector<64x128xf32>,
    return
  }
}

</mosaic_0001>

<bundles_post_ra>
// kernel: tpu_custom_call.1
= control target key start
LH: loop header
LB: loop body
LE: loop exit
PB: predicated region body
PF: predicated region fallthrough
CT: control target
= control target key end

     0   :  { %11 = vsyncpa [#allocation3], 0  ;;  %s1063_s0 = inlined_call_operand.hbm [shape: bf16[64,64], index: 0, kind: input, shape index: {}]   ;;  %s1064_s1 = inlined_call_operand.hbm [shape: bf16[64,128], index: 1, kind: input, shape index: {}]   ;;  %s1065_s2 = inlined_call_operand.hbm [shape: bf16[128,128], index: 2, kind: input, shape index: {}]   ;;  %s1066_s3 = inlined_call_operand.vmem [shape: f32[1,128], index: 3, kind: input, shape index: {}]   ;;  %s1067_s4 = inlined_call_operand.hbm [shape: bf16[128,128], index: 4, kind: input, shape index: {}]   ;;  %s1068_s5 = inlined_call_operand.vmem [shape: f32[1,128], index: 5, kind: input, shape index: {}]   ;;  %s1069_s6 = inlined_call_operand.hbm [shape: f32[64,128], index: 6, kind: output, shape index: {}]  }
   0x1   :  { %12 = vsyncpa [#allocation6], 0 }
   0x2   :  { %13 = vsyncpa [#allocation9], 0 }
   0x3   :  { %14 = vsyncpa [#allocation4], 0  ;;  %s907_s21 = smov [#allocation5]   ;;  %s908_s23 = smov [#allocation2]  }
   0x4   :  { %s32_s22 = sshll.u32 %s907_s21, 4  ;;  %s20_s24 = sshll.u32 %s908_s23, 4  ;;  %s33_s22 = int_to_ptr.vmem [resolvable:$true] %s32_s22  ;;  %s951_s24 = int_to_ptr.vmem [resolvable:$true] %s20_s24 }
   0x5   :  { %s789_s27 = scalar_lea.hbm %s1064_s1, 512 }
   0x6   :  { %p790_p0 = scmp.ne.s32.totalorder %s1064_s1, %s789_s27  ;;  %p793_p1 = scmp.lt.u32.totalorder %s789_s27, %s1064_s1 }
   0x8   :  { %p795_p2 = pnand %p793_p1, %p790_p0 }
   0xa   :  { %798 = shalt.err (!%p795_p2)
}
   0xb   :  { %s799_s8 = scalar_lea.vmem %s33_s22, 512  ;;  %p804_p4 = scmp.lt.s32.totalorder %s33_s22, %s33_s22 }
   0xc   :  { %p800_p3 = scmp.ne.s32.totalorder %s33_s22, %s799_s8  ;;  %p805_p5 = scmp.lt.s32.totalorder %s799_s8, %s799_s8 }
   0xe   :  { %p806_p6 = por %p805_p5, %p804_p4 }
  0x10   :  { %p807_p7 = pnand %p806_p6, %p800_p3 }
  0x12   :  { %810 = shalt.err (!%p807_p7)
}
  0x13   :  { %s909_s9 = smov 64   ;;  %s910_s10 = smov 4  }
  0x14   :  { %38 = dma.hbm_to_vmem [thread:$0]  %s1064_s1, 512, %s33_s22, [#allocation6], %s909_s9, %s909_s9, %s910_s10  }
  0x15   :  { %s811_s15 = scalar_lea.hbm %s1063_s0, 512 }
  0x16   :  { %p812_p8 = scmp.ne.s32.totalorder %s1063_s0, %s811_s15  ;;  %p815_p9 = scmp.lt.u32.totalorder %s811_s15, %s1063_s0 }
  0x18   :  { %p817_p10 = pnand %p815_p9, %p812_p8 }
  0x1a   :  { %820 = shalt.err (!%p817_p10)
}
  0x1b   :  { %s821_s20 = scalar_lea.vmem %s951_s24, 512  ;;  %p826_p12 = scmp.lt.s32.totalorder %s951_s24, %s951_s24 }
  0x1c   :  { %p822_p11 = scmp.ne.s32.totalorder %s951_s24, %s821_s20  ;;  %p827_p13 = scmp.lt.s32.totalorder %s821_s20, %s821_s20 }
  0x1e   :  { %p828_p0 = por %p827_p13, %p826_p12 }
  0x20   :  { %p829_p1 = pnand %p828_p0, %p822_p11 }
  0x22   :  { %832 = shalt.err (!%p829_p1)
}
  0x23   :  { %26 = dma.hbm_to_vmem [thread:$0]  %s1063_s0, 512, %s951_s24, [#allocation3], %s909_s9, %s909_s9, %s910_s10  }
  0x24   :  { %s911_s22 = smov [#allocation7]   ;;  %s912_s25 = smov [#allocation8]  }
  0x25   :  { %s44_s23 = sshll.u32 %s911_s22, 4  ;;  %s58_s26 = sshll.u32 %s912_s25, 4  ;;  %s45_s23 = int_to_ptr.vmem [resolvable:$true] %s44_s23  ;;  %s988_s26 = int_to_ptr.vmem [resolvable:$true] %s58_s26 }
  0x26   :  { %s833_s29 = scalar_lea.hbm %s1065_s2, 1024 }
  0x27   :  { %p834_p2 = scmp.ne.s32.totalorder %s1065_s2, %s833_s29  ;;  %p837_p3 = scmp.lt.u32.totalorder %s833_s29, %s1065_s2 }
  0x29   :  { %p839_p4 = pnand %p837_p3, %p834_p2 }
  0x2b   :  { %842 = shalt.err (!%p839_p4)
}
  0x2c   :  { %s843_s0 = scalar_lea.vmem %s45_s23, 1024  ;;  %p848_p6 = scmp.lt.s32.totalorder %s45_s23, %s45_s23 }
  0x2d   :  { %p844_p5 = scmp.ne.s32.totalorder %s45_s23, %s843_s0  ;;  %p849_p7 = scmp.lt.s32.totalorder %s843_s0, %s843_s0 }
  0x2f   :  { %p850_p8 = por %p849_p7, %p848_p6 }
  0x31   :  { %p851_p9 = pnand %p850_p8, %p844_p5 }
  0x33   :  { %854 = shalt.err (!%p851_p9)
}
  0x34   :  { %50 = dma.hbm_to_vmem [thread:$0]  %s1065_s2, 1024, %s45_s23, [#allocation6], %s909_s9, %s909_s9, %s910_s10  }
  0x35   :  { %s855_s15 = scalar_lea.hbm %s1067_s4, 1024 }
  0x36   :  { %p856_p10 = scmp.ne.s32.totalorder %s1067_s4, %s855_s15  ;;  %p859_p11 = scmp.lt.u32.totalorder %s855_s15, %s1067_s4 }
  0x38   :  { %p861_p12 = pnand %p859_p11, %p856_p10 }
  0x3a   :  { %864 = shalt.err (!%p861_p12)
}
  0x3b   :  { %s865_s20 = scalar_lea.vmem %s988_s26, 1024  ;;  %p870_p0 = scmp.lt.s32.totalorder %s988_s26, %s988_s26 }
  0x3c   :  { %p866_p13 = scmp.ne.s32.totalorder %s988_s26, %s865_s20  ;;  %p871_p1 = scmp.lt.s32.totalorder %s865_s20, %s865_s20 }
  0x3e   :  { %p872_p2 = por %p871_p1, %p870_p0 }
  0x40   :  { %p873_p3 = pnand %p872_p2, %p866_p13 }
  0x42   :  { %876 = shalt.err (!%p873_p3)
}
  0x43   :  { %64 = dma.hbm_to_vmem [thread:$0]  %s1067_s4, 1024, %s988_s26, [#allocation9], %s909_s9, %s909_s9, %s910_s10  }
  0x44   :  { %899 = dma.done.wait [#allocation3], 512  }
  0x45   :  { %900 = vsyncadd [#allocation3], 4294966784 }
  0x46   :  { %901 = dma.done.wait [#allocation6], 1536  }
  0x47   :  { %902 = vsyncadd [#allocation6], 4294965760 }
  0x48   :  { %903 = dma.done.wait [#allocation9], 1024  }
  0x49   :  { %904 = vsyncadd [#allocation9], 4294966272  ;;  %v765_v0 = vld [vmem:[#allocation7] sm:$0xff]   ;;  %v766_v1 = vld [vmem:[#allocation7 + $0x8] sm:$0xff]   ;;  %vm280_vm0 = vcmask 523264   ;;  %s913_s21 = smov [#allocation10]  }
  0x4a   :  { %676 = vmatprep.subr.bf16.mxu0 %v765_v0  ;;  %v767_v2 = vld [vmem:[#allocation7 + $0x10] sm:$0xff]   ;;  %v768_v3 = vld [vmem:[#allocation7 + $0x18] sm:$0xff]   ;;  %v773_v4 = vld [vmem:[#allocation5] sm:$0xff]   ;;  %s588_s22 = sshll.u32 %s913_s21, 4  ;;  %s589_s22 = int_to_ptr.vmem [resolvable:$true] %s588_s22 }
  0x4b   :  { %677 = vmatpush3.bf16.msra.mxu0 %v765_v0  ;;  %692 = vmatprep.mubr.bf16.mxu0 %v773_v4  ;;  %v769_v5 = vld [vmem:[#allocation7 + $0x20] sm:$0xff]   ;;  %v770_v6 = vld [vmem:[#allocation7 + $0x28] sm:$0xff]   ;;  %v771_v7 = vld [vmem:[#allocation7 + $0x30] sm:$0xff]   ;;  %p882_p5 = scmp.lt.s32.totalorder %s589_s22, %s589_s22 }
  0x4c   :  { %678 = vmatprep.subr.bf16.mxu0 %v766_v1  ;;  %v772_v8 = vld [vmem:[#allocation7 + $0x38] sm:$0xff]   ;;  %v774_v9 = vld [vmem:[#allocation5 + $0x8] sm:$0xff]   ;;  %v775_v10 = vld [vmem:[#allocation5 + $0x10] sm:$0xff]  }
  0x4d   :  { %v776_v11 = vld [vmem:[#allocation5 + $0x18] sm:$0xff]   ;;  %v777_v12 = vld [vmem:[#allocation2] sm:$0xff]   ;;  %v1027_v26 = vld [vmem:[#allocation2 + $0x8] sm:$0xff]  }
  0x4e   :  { %708 = vmatprep.mubr.msk.bf16.mxu1 %vm280_vm0, %v777_v12  ;;  %v781_v25 = vld [vmem:[#allocation8] sm:$0xff]   ;;  %v1029_v27 = vld [vmem:[#allocation2 + $0x10] sm:$0xff]   ;;  %v782_v28 = vld [vmem:[#allocation8 + $0x8] sm:$0xff]  }
  0x4f   :  { %679 = vmatpush3.bf16.msra.mxu0 %v766_v1  ;;  %v783_v29 = vld [vmem:[#allocation8 + $0x10] sm:$0xff]   ;;  %v1035_v30 = vld [vmem:[#allocation2 + $0x18] sm:$0xff]   ;;  %v785_v32 = vld [vmem:[#allocation8 + $0x20] sm:$0xff]  }
  0x50   :  { %680 = vmatprep.subr.bf16.mxu0 %v767_v2  ;;  %v784_v31 = vld [vmem:[#allocation8 + $0x18] sm:$0xff]   ;;  %v786_v33 = vld [vmem:[#allocation8 + $0x28] sm:$0xff]   ;;  %v787_v34 = vld [vmem:[#allocation8 + $0x30] sm:$0xff]  }
  0x51   :  { %v788_v35 = vld [vmem:[#allocation8 + $0x38] sm:$0xff]   ;;  %v614_v36 = vld [vmem:[%s1066_s3] ss:$0 sm:$0xff] }
  0x53   :  { %681 = vmatpush3.bf16.msra.mxu0 %v767_v2 }
  0x54   :  { %682 = vmatprep.subr.bf16.mxu0 %v768_v3 }
  0x57   :  { %683 = vmatpush3.bf16.msra.mxu0 %v768_v3 }
  0x58   :  { %684 = vmatprep.subr.bf16.mxu0 %v769_v5 }
  0x5b   :  { %685 = vmatpush3.bf16.msra.mxu0 %v769_v5 }
  0x5c   :  { %686 = vmatprep.subr.bf16.mxu0 %v770_v6 }
  0x5f   :  { %687 = vmatpush3.bf16.msra.mxu0 %v770_v6 }
  0x60   :  { %688 = vmatprep.subr.bf16.mxu0 %v771_v7 }
  0x63   :  { %689 = vmatpush3.bf16.msra.mxu0 %v771_v7 }
  0x64   :  { %690 = vmatprep.subr.bf16.mxu0 %v772_v8 }
  0x67   :  { %691 = vmatpush3.bf16.msra.mxu0 %v772_v8 }
  0x6a   :  { %693 = vmatmul.mubr.bf16.vlgmr.msra.gmra.mrb[0].mxu0 %v774_v9 }
  0x6b   :  { %696 = vmatprep.mubr.bf16.mxu0 %v775_v10 }
  0x72   :  { %697 = vmatmul.mubr.bf16.gmra.mrb[4].mxu0 %v776_v11 }
  0x73   :  { %748 = vmatprep.mubr.msk.bf16.mxu0 %vm280_vm0, %v777_v12 }
 0x13d   :  { %v694_v13 = vpop.f32.mrb[0].mxu0 }
 0x13e   :  { %v218_v14 = vpop.f32.mrb[1].mxu0 }
 0x13f   :  { %v695_v15 = vpop.f32.mrb[2].mxu0 }
 0x140   :  { %v250_v16 = vpack.c.bf16 %v695_v15, %v694_v13  ;;  %v221_v17 = vpop.f32.mrb[3].mxu0  ;;  %v631_v13 = vld [vmem:[%s1068_s5] ss:$0 sm:$0xff]  ;;  %s877_s5 = scalar_lea.vmem %s589_s22, 1024 }
 0x141   :  { %v249_v18 = vpack.c.bf16 %v221_v17, %v218_v14  ;;  %p878_p4 = scmp.ne.s32.totalorder %s589_s22, %s877_s5  ;;  %p883_p6 = scmp.lt.s32.totalorder %s877_s5, %s877_s5 }
 0x143   :  { %700 = vmatprep.subr.bf16.mxu1 %v249_v18  ;;  %p884_p7 = por %p883_p6, %p882_p5 }
 0x144   :  { %701 = vmatpush3.bf16.msra.mxu1 %v249_v18 }
 0x145   :  { %v698_v19 = vpop.f32.mrb[4].mxu0  ;;  %702 = vmatprep.subr.bf16.mxu1 %v250_v16  ;;  %p885_p8 = pnand %p884_p7, %p878_p4 }
 0x146   :  { %v234_v20 = vpop.f32.mrb[5].mxu0 }
 0x147   :  { %v699_v21 = vpop.f32.mrb[6].mxu0 }
 0x148   :  { %v252_v22 = vpack.c.bf16 %v699_v21, %v698_v19  ;;  %v237_v23 = vpop.f32.mrb[7].mxu0  ;;  %703 = vmatpush3.bf16.msra.mxu1 %v250_v16 }
 0x149   :  { %v251_v24 = vpack.c.bf16 %v237_v23, %v234_v20 }
 0x14b   :  { %704 = vmatprep.subr.bf16.mxu1 %v251_v24 }
 0x14c   :  { %705 = vmatpush3.bf16.msra.mxu1 %v251_v24 }
 0x14d   :  { %706 = vmatprep.subr.bf16.mxu1 %v252_v22 }
 0x150   :  { %707 = vmatpush3.bf16.msra.mxu1 %v252_v22 }
 0x151   :  { %716 = vmatprep.subr.bf16.mxu1 %v781_v25 }
 0x153   :  { %709 = vmatmul.mubr.msk.bf16.vlgmr.msra.gmra.mrb[0].mxu1 %vm280_vm0, %v1027_v26 }
 0x154   :  { %712 = vmatprep.mubr.msk.bf16.mxu1 %vm280_vm0, %v1029_v27  ;;  %717 = vmatpush3.bf16.msra.mxu1 %v781_v25 }
 0x155   :  { %718 = vmatprep.subr.bf16.mxu1 %v782_v28 }
 0x158   :  { %719 = vmatpush3.bf16.msra.mxu1 %v782_v28 }
 0x159   :  { %720 = vmatprep.subr.bf16.mxu1 %v783_v29 }
 0x15b   :  { %713 = vmatmul.mubr.msk.bf16.gmra.mrb[4].mxu1 %vm280_vm0, %v1035_v30 }
 0x15c   :  { %721 = vmatpush3.bf16.msra.mxu1 %v783_v29 }
 0x15d   :  { %722 = vmatprep.subr.bf16.mxu1 %v784_v31 }
 0x160   :  { %723 = vmatpush3.bf16.msra.mxu1 %v784_v31 }
 0x161   :  { %724 = vmatprep.subr.bf16.mxu1 %v785_v32 }
 0x164   :  { %725 = vmatpush3.bf16.msra.mxu1 %v785_v32 }
 0x165   :  { %726 = vmatprep.subr.bf16.mxu1 %v786_v33 }
 0x168   :  { %727 = vmatpush3.bf16.msra.mxu1 %v786_v33 }
 0x169   :  { %728 = vmatprep.subr.bf16.mxu1 %v787_v34 }
 0x16c   :  { %729 = vmatpush3.bf16.msra.mxu1 %v787_v34 }
 0x16d   :  { %730 = vmatprep.subr.bf16.mxu1 %v788_v35 }
 0x170   :  { %731 = vmatpush3.bf16.msra.mxu1 %v788_v35 }
 0x226   :  { %v710_v37 = vpop.f32.mrb[0].mxu1 }
 0x227   :  { %v336_v38 = vadd.f32 %v710_v37, %v614_v36  ;;  %v327_v39 = vpop.f32.mrb[1].mxu1 }
 0x228   :  { %v328_v40 = vadd.f32 %v614_v36, %v327_v39  ;;  %v711_v41 = vpop.f32.mrb[2].mxu1 }
 0x229   :  { %v339_v42 = vadd.f32 %v711_v41, %v614_v36  ;;  %v330_v43 = vpop.f32.mrb[3].mxu1  ;;  %v360_v45 = vmax.f32 %v336_v38, 0.0 }
 0x22a   :  { %v331_v44 = vadd.f32 %v614_v36, %v330_v43  ;;  %v358_v47 = vmax.f32 %v328_v40, 0.0 }
 0x22b   :  { %v361_v46 = vmax.f32 %v339_v42, 0.0 }
 0x22c   :  { %v359_v48 = vmax.f32 %v331_v44, 0.0 }
 0x22d   :  { %v367_v49 = vpack.c.bf16 %v361_v46, %v360_v45 }
 0x22e   :  { %v366_v50 = vpack.c.bf16 %v359_v48, %v358_v47  ;;  %v714_v51 = vpop.f32.mrb[4].mxu1 }
 0x22f   :  { %v352_v52 = vadd.f32 %v714_v51, %v614_v36  ;;  %v343_v53 = vpop.f32.mrb[5].mxu1 }
 0x230   :  { %v344_v54 = vadd.f32 %v614_v36, %v343_v53  ;;  %v715_v55 = vpop.f32.mrb[6].mxu1  ;;  %732 = vmatprep.mubr.bf16.mxu1 %v366_v50 }
 0x231   :  { %v355_v56 = vadd.f32 %v715_v55, %v614_v36  ;;  %v346_v57 = vpop.f32.mrb[7].mxu1  ;;  %733 = vmatmul.mubr.bf16.vlgmr.msra.gmra.mrb[8].mxu1 %v367_v49  ;;  %v364_v59 = vmax.f32 %v352_v52, 0.0 }
 0x232   :  { %v347_v58 = vadd.f32 %v614_v36, %v346_v57  ;;  %v362_v61 = vmax.f32 %v344_v54, 0.0 }
 0x233   :  { %v365_v60 = vmax.f32 %v355_v56, 0.0 }
 0x234   :  { %v363_v62 = vmax.f32 %v347_v58, 0.0 }
 0x235   :  { %v369_v63 = vpack.c.bf16 %v365_v60, %v364_v59 }
 0x236   :  { %v368_v0 = vpack.c.bf16 %v363_v62, %v362_v61 }
 0x238   :  { %736 = vmatprep.mubr.bf16.mxu1 %v368_v0 }
 0x239   :  { %737 = vmatmul.mubr.bf16.gmra.mrb[12].mxu1 %v369_v63 }
 0x304   :  { %v734_v1 = vpop.f32.mrb[8].mxu1 }
 0x305   :  { %v468_v2 = vpop.f32.mrb[9].mxu1 }
 0x306   :  { %v735_v3 = vpop.f32.mrb[10].mxu1 }
 0x307   :  { %v500_v4 = vpack.c.bf16 %v735_v3, %v734_v1  ;;  %v471_v5 = vpop.f32.mrb[11].mxu1 }
 0x308   :  { %v499_v6 = vpack.c.bf16 %v471_v5, %v468_v2 }
 0x30a   :  { %740 = vmatprep.subr.bf16.mxu0 %v499_v6 }
 0x30b   :  { %741 = vmatpush3.bf16.msra.mxu0 %v499_v6 }
 0x30c   :  { %v738_v7 = vpop.f32.mrb[12].mxu1  ;;  %742 = vmatprep.subr.bf16.mxu0 %v500_v4 }
 0x30d   :  { %v484_v8 = vpop.f32.mrb[13].mxu1 }
 0x30e   :  { %v739_v9 = vpop.f32.mrb[14].mxu1 }
 0x30f   :  { %v502_v10 = vpack.c.bf16 %v739_v9, %v738_v7  ;;  %v487_v11 = vpop.f32.mrb[15].mxu1  ;;  %743 = vmatpush3.bf16.msra.mxu0 %v500_v4 }
 0x310   :  { %v501_v12 = vpack.c.bf16 %v487_v11, %v484_v8 }
 0x312   :  { %744 = vmatprep.subr.bf16.mxu0 %v501_v12 }
 0x313   :  { %745 = vmatpush3.bf16.msra.mxu0 %v501_v12 }
 0x314   :  { %746 = vmatprep.subr.bf16.mxu0 %v502_v10 }
 0x317   :  { %747 = vmatpush3.bf16.msra.mxu0 %v502_v10 }
 0x31a   :  { %749 = vmatmul.mubr.msk.bf16.vlgmr.msra.gmra.mrb[8].mxu0 %vm280_vm0, %v1027_v26 }
 0x31b   :  { %752 = vmatprep.mubr.msk.bf16.mxu0 %vm280_vm0, %v1029_v27 }
 0x322   :  { %753 = vmatmul.mubr.msk.bf16.gmra.mrb[12].mxu0 %vm280_vm0, %v1035_v30 }
 0x3ed   :  { %v750_v14 = vpop.f32.mrb[8].mxu0 }
 0x3ee   :  { %v553_v15 = vadd.f32 %v750_v14, %v631_v13  ;;  %v544_v16 = vpop.f32.mrb[9].mxu0 }
 0x3ef   :  { %v545_v17 = vadd.f32 %v631_v13, %v544_v16  ;;  %v751_v18 = vpop.f32.mrb[10].mxu0 }
 0x3f0   :  { %577 = vst [vmem:[#allocation10 + $0x10] sm:$0xff] %v553_v15  ;;  %v556_v19 = vadd.f32 %v751_v18, %v631_v13  ;;  %v547_v20 = vpop.f32.mrb[11].mxu0 }
 0x3f1   :  { %575 = vst [vmem:[#allocation10] sm:$0xff] %v545_v17  ;;  %v548_v21 = vadd.f32 %v631_v13, %v547_v20 }
 0x3f2   :  { %578 = vst [vmem:[#allocation10 + $0x18] sm:$0xff] %v556_v19 }
 0x3f3   :  { %576 = vst [vmem:[#allocation10 + $0x8] sm:$0xff] %v548_v21 }
 0x3f5   :  { %v754_v22 = vpop.f32.mrb[12].mxu0 }
 0x3f6   :  { %v569_v23 = vadd.f32 %v754_v22, %v631_v13  ;;  %v560_v24 = vpop.f32.mrb[13].mxu0 }
 0x3f7   :  { %v561_v25 = vadd.f32 %v631_v13, %v560_v24  ;;  %v755_v26 = vpop.f32.mrb[14].mxu0 }
 0x3f8   :  { %581 = vst [vmem:[#allocation10 + $0x30] sm:$0xff] %v569_v23  ;;  %v572_v27 = vadd.f32 %v755_v26, %v631_v13  ;;  %v563_v28 = vpop.f32.mrb[15].mxu0 }
 0x3f9   :  { %579 = vst [vmem:[#allocation10 + $0x20] sm:$0xff] %v561_v25  ;;  %v564_v29 = vadd.f32 %v631_v13, %v563_v28 }
 0x3fa   :  { %582 = vst [vmem:[#allocation10 + $0x38] sm:$0xff] %v572_v27 }
 0x3fb   :  { %580 = vst [vmem:[#allocation10 + $0x28] sm:$0xff] %v564_v29 }
 0x3fc   :  { %888 = shalt.err (!%p885_p8)
}
 0x3fd   :  { %s889_s26 = scalar_lea.hbm %s1069_s6, 1024 }
 0x3fe   :  { %p890_p9 = scmp.ne.s32.totalorder %s1069_s6, %s889_s26  ;;  %p893_p10 = scmp.lt.u32.totalorder %s889_s26, %s1069_s6 }
 0x400   :  { %p895_p11 = pnand %p893_p10, %p890_p9 }
 0x402   :  { %898 = shalt.err (!%p895_p11)
}
 0x403   :  { %s914_s7 = smov 128   ;;  %s915_s8 = smov 8  }
 0x404   :  { %594 = dma.vmem_to_hbm [thread:$0]  %s589_s22, 1024, %s1069_s6, [#allocation4], %s914_s7, %s914_s7, %s915_s8  }
 0x405   :  { %905 = dma.done.wait [#allocation4], 1024  }
 0x406   :  { %906 = vsyncadd [#allocation4], 4294966272 }
 0x407   :  { %598 = vsyncpa [#allocation3], 1 }
 0x408   :  { %599 = vsyncpa [#allocation6], 1 }
 0x409   :  { %600 = vsyncpa [#allocation9], 1 }
 0x40a   :  { %601 = vsyncpa [#allocation4], 1 }

</bundles_post_ra>
